<compile_context>
chip_gen: v7x
topology: tpu7x:2x2x1
jax: 0.10.0
libtpu: 0.0.40
codegen_flags: <defaults>
</compile_context>

<pallas_src>
import jax
import jax.numpy as jnp
from jax.experimental import pallas as pl
from jax.experimental.pallas import tpu as pltpu


_LN_EPS = 1e-5
_MEGACORE_MIN_ROWS = 256      # batch size above which we force >= 2 grid steps


def _cls_ln_fc_kernel(x_ref, w_ref, b_ref, o_ref):
    """x_ref: [TB, H] CLS rows; w_ref: [H, Cp] bf16; b_ref: [1, Cp] f32; o_ref: [TB, Cp]."""
    x = x_ref[...].astype(jnp.float32)
    h_inv = 1.0 / x.shape[-1]

    # Single-pass LayerNorm statistics (biased variance, eps=1e-5). The affine
    # (gamma/beta) has been folded into w_ref/b_ref by the wrapper.
    s1 = jnp.sum(x, axis=-1, keepdims=True)
    s2 = jnp.sum(x * x, axis=-1, keepdims=True)
    mean = s1 * h_inv
    var = s2 * h_inv - mean * mean
    x_norm = (x - mean) * jax.lax.rsqrt(var + _LN_EPS)

    # Linear: [TB, H] @ [H, Cp] + [1, Cp]. bf16 operands, f32 accumulation
    # (single MXU pass; PyTorch-exact f32 would require Precision.HIGHEST).
    out = jnp.dot(x_norm.astype(w_ref.dtype), w_ref[...],
                  preferred_element_type=jnp.float32)
    o_ref[...] = (out + b_ref[...]).astype(o_ref.dtype)


def _vmem_capacity_bytes():
    """Physical VMEM of the current generation; conservative fallback."""
    try:
        cap = getattr(pltpu.get_tpu_info(), "vmem_capacity_bytes", None)
        if cap:
            return int(cap)
    except Exception:
        pass
    return 64 << 20            # assume v7x-per-TC sizing if the query fails


def _pick_batch_tile(B, H, itemsize, x_tile_budget, row_cap):
    """Rows per grid step, sublane-aligned for the input dtype."""
    align = max(8, 32 // itemsize)            # 8 f32, 16 bf16, 32 int8/fp8
    if B <= align:
        return B                              # block == full batch dim (always legal)
    tb = min(B, row_cap, max(align, x_tile_budget // max(1, H * itemsize)))
    tb = max(align, (tb // align) * align)
    if B >= _MEGACORE_MIN_ROWS:
        # Guarantee >= 2 grid steps so the "parallel" batch axis has work to
        # shard across v7x's two TensorCores.
        half = ((pl.cdiv(B, 2) + align - 1) // align) * align
        tb = min(tb, half)
    return tb


def cm2_linear_classifier(x, gamma, beta, w, b, *, pad_output=False):
    """x: [B, S, H]; gamma/beta: [H]; w: [H, C]; b: [C].

    Returns logits [B, C]; with pad_output=True returns the lane-padded
    [B, Cp] slab so a jitted caller can fuse the [:, :C] slice downstream
    rather than paying a separate HBM pass here.
    """
    B, S, H = x.shape
    C = w.shape[1]
    itemsize = jnp.dtype(x.dtype).itemsize
    out_itemsize = itemsize

    # ---- Fold the LayerNorm affine into the linear (done once, in f32). ----
    gamma_f = gamma.astype(jnp.float32)
    beta_f = beta.astype(jnp.float32)
    w_f = w.astype(jnp.float32)
    b_f = b.astype(jnp.float32)
    w_fold = gamma_f[:, None] * w_f                                    # [H, C]
    b_fold = jnp.dot(beta_f, w_f,
                     precision=jax.lax.Precision.HIGHEST) + b_f        # [C]

    # ---- Lane-dense output: pad classifier width to a multiple of 128. ----
    Cp = max(128, ((C + 127) // 128) * 128)
    w_pad = jnp.zeros((H, Cp), jnp.bfloat16).at[:, :C].set(
        w_fold.astype(jnp.bfloat16))
    b_pad = jnp.zeros((1, Cp), jnp.float32).at[:, :C].set(b_fold)

    # ---- CLS-token slice fused into the BlockSpec. ----
    # View x as [B, S*H] (free row-major collapse); the CLS token of batch row
    # i occupies columns [0, H), so a (TB, H) block with index_map (i, 0) DMAs
    # exactly the CLS rows from HBM (strided, H-contiguous segments).
    if H % 128 == 0:
        x_in = x.reshape(B, S * H)
    else:
        # TODO(synk): hidden sizes not a multiple of 128 fall back to an
        # XLA-side CLS slice so the block's last dim equals the array dim.
        x_in = x[:, 0, :]

    # ---- Generation-aware tile sizing. ----
    vmem_cap = _vmem_capacity_bytes()
    big_vmem = vmem_cap >= (96 << 20)                   # v5e / v6e: 128 MiB
    x_tile_budget = (12 << 20) if big_vmem else (6 << 20)
    row_cap = 8192 if big_vmem else 4096
    TB = _pick_batch_tile(B, H, itemsize, x_tile_budget, row_cap)
    grid = (pl.cdiv(B, TB),)

    x_spec = pl.BlockSpec((TB, H), lambda i: (i, 0))
    # Constant index_maps keep W'/b' VMEM-resident across the grid.
    # TODO(synk): pipeline_mode=pl.Buffered(1) would pin them to one buffer.
    w_spec = pl.BlockSpec((H, Cp), lambda i: (0, 0))
    b_spec = pl.BlockSpec((1, Cp), lambda i: (0, 0))
    o_spec = pl.BlockSpec((TB, Cp), lambda i: (i, 0))

    vmem_bytes = (2 * TB * H * itemsize          # x tile (double-buffered)
                  + 2 * TB * Cp * out_itemsize   # out tile (double-buffered)
                  + 2 * H * Cp * 2               # folded bf16 weights
                  + 2 * Cp * 4)                  # folded f32 bias
    vmem_limit = int(vmem_bytes * 1.5) + (2 << 20)
    vmem_limit = max(16 << 20, min(vmem_limit, (vmem_cap * 3) // 4))

    cost = pl.CostEstimate(
        flops=2 * B * H * Cp + 8 * B * H,
        transcendentals=B,                       # one rsqrt per row
        bytes_accessed=(B * H * itemsize + H * Cp * 2 + Cp * 4
                        + B * Cp * out_itemsize),
    )

    out_padded = pl.pallas_call(
        _cls_ln_fc_kernel,
        out_shape=jax.ShapeDtypeStruct((B, Cp), x.dtype),
        grid=grid,
        in_specs=[x_spec, w_spec, b_spec],
        out_specs=o_spec,
        compiler_params=pltpu.CompilerParams(
            dimension_semantics=("parallel",),
            vmem_limit_bytes=int(vmem_limit),
        ),
        cost_estimate=cost,
    )(x_in, w_pad, b_pad)

    if pad_output:
        return out_padded
    return out_padded[:, :C]


def _reference(x, gamma, beta, w, b):
    """Pure-JAX f32 reference matching the PyTorch module (un-folded affine)."""
    x_cls = x[:, 0, :].astype(jnp.float32)
    mean = jnp.mean(x_cls, axis=-1, keepdims=True)
    var = jnp.mean((x_cls - mean) ** 2, axis=-1, keepdims=True)
    xn = (x_cls - mean) / jnp.sqrt(var + _LN_EPS)
    xn = xn * gamma.astype(jnp.float32) + beta.astype(jnp.float32)
    return jnp.dot(xn, w.astype(jnp.float32),
                   precision=jax.lax.Precision.HIGHEST) + b.astype(jnp.float32)


if __name__ == "__main__":
    key = jax.random.PRNGKey(0)

    def make_inputs(k, B, S, H, C, dtype=jnp.float32):
        k_x, k_w, k_b, k_g, k_be = jax.random.split(k, 5)
        bound = 1.0 / (H ** 0.5)
        x = jax.random.normal(k_x, (B, S, H), jnp.float32).astype(dtype)
        w = jax.random.uniform(k_w, (H, C), minval=-bound, maxval=bound,
                               dtype=jnp.float32)
        b = jax.random.uniform(k_b, (C,), minval=-bound, maxval=bound,
                               dtype=jnp.float32)
        gamma = 1.0 + 0.01 * jax.random.normal(k_g, (H,), jnp.float32)
        beta = 0.01 * jax.random.normal(k_be, (H,), jnp.float32)
        return x, gamma, beta, w, b

    k1, k2, k3 = jax.random.split(key, 3)

    # Case 1: module default hidden_dim=128, multi-class head, single tile.
    B, S, H = 2, 8, 128
    num_class = 3
    C = 1 if num_class <= 2 else num_class
    x, gamma, beta, w, b = make_inputs(k1, B, S, H, C)
    logits = cm2_linear_classifier(x, gamma, beta, w, b)
    jax.block_until_ready(logits)
    ref = _reference(x, gamma, beta, w, b)
    assert logits.shape == (B, C), logits.shape
    assert jnp.allclose(logits, ref, atol=2e-2, rtol=2e-2)

    # Case 2: binary head (C=1), batch larger than the tile -> multi-step grid
    # with a partial final batch block and VMEM-resident weights.
    B2, S2, H2 = 20, 4, 128
    num_class2 = 2
    C2 = 1 if num_class2 <= 2 else num_class2
    x2, g2, be2, w2, b2 = make_inputs(k2, B2, S2, H2, C2)
    logits2 = cm2_linear_classifier(x2, g2, be2, w2, b2)
    jax.block_until_ready(logits2)
    ref2 = _reference(x2, g2, be2, w2, b2)
    assert logits2.shape == (B2, C2), logits2.shape
    assert jnp.allclose(logits2, ref2, atol=2e-2, rtol=2e-2)

    # Case 3: bf16 input, batch >= 256 -> forced 2-step grid (megacore path)
    # with 16-row sublane alignment.
    B3, S3, H3 = 320, 3, 256
    num_class3 = 5
    C3 = 1 if num_class3 <= 2 else num_class3
    x3, g3, be3, w3, b3 = make_inputs(k3, B3, S3, H3, C3, dtype=jnp.bfloat16)
    logits3 = cm2_linear_classifier(x3, g3, be3, w3, b3)
    jax.block_until_ready(logits3)
    ref3 = _reference(x3, g3, be3, w3, b3)
    assert logits3.shape == (B3, C3), logits3.shape
    assert jnp.allclose(logits3.astype(jnp.float32), ref3, atol=5e-2, rtol=5e-2)

    print("KERNEL_OK")
</pallas_src>

<mosaic_0001>
module attributes {stable_mosaic.version = 11 : i64} {
  func.func @_cls_ln_fc_kernel(%arg0: i32, %arg1: memref<2x128xf32, #tpu.memory_space<vmem>>, %arg2: memref<128x128xbf16, #tpu.memory_space<vmem>>, %arg3: memref<1x128xf32, #tpu.memory_space<vmem>>, %arg4: memref<2x128xf32, #tpu.memory_space<vmem>>) attributes {dimension_semantics = [#tpu.dimension_semantics<parallel>], iteration_bounds = array<i64: 1>, scalar_prefetch = 0 : i64, scratch_operands = 0 : i64, tpu.core_type = #tpu.core_type<tc>, window_params = [{transform_indices = @transform_0, window_bounds = array<i64: 2, 128>}, {pipeline_mode = #tpu.pipeline_mode<synchronous>, transform_indices = @transform_1, window_bounds = array<i64: 128, 128>}, {pipeline_mode = #tpu.pipeline_mode<synchronous>, transform_indices = @transform_2, window_bounds = array<i64: 1, 128>}, {transform_indices = @transform_3, window_bounds = array<i64: 2, 128>}]} {
    %c0 = arith.constant 0 : index
    %c0_0 = arith.constant 0 : index
    %0 = vector.load %arg1[%c0, %c0_0] : memref<2x128xf32, #tpu.memory_space<vmem>>, vector<2x128xf32>
    %cst = arith.constant dense<0.000000e+00> : vector<2xf32>
    %1 = vector.multi_reduction <add>, %0, %cst [1] : vector<2x128xf32> to vector<2xf32>
    %2 = vector.shape_cast %1 : vector<2xf32> to vector<2x1xf32>
    %3 = arith.mulf %0, %0 : vector<2x128xf32>
    %cst_1 = arith.constant dense<0.000000e+00> : vector<2xf32>
    %4 = vector.multi_reduction <add>, %3, %cst_1 [1] : vector<2x128xf32> to vector<2xf32>
    %5 = vector.shape_cast %4 : vector<2xf32> to vector<2x1xf32>
    %cst_2 = arith.constant 7.812500e-03 : f32
    %6 = vector.broadcast %cst_2 : f32 to vector<2x1xf32>
    %7 = arith.mulf %2, %6 : vector<2x1xf32>
    %cst_3 = arith.constant 7.812500e-03 : f32
    %8 = vector.broadcast %cst_3 : f32 to vector<2x1xf32>
    %9 = arith.mulf %5, %8 : vector<2x1xf32>
    %10 = arith.mulf %7, %7 : vector<2x1xf32>
    %11 = arith.subf %9, %10 : vector<2x1xf32>
    %12 = vector.broadcast %7 : vector<2x1xf32> to vector<2x128xf32>
    %13 = arith.subf %0, %12 : vector<2x128xf32>
    %cst_4 = arith.constant 9.99999974E-6 : f32
    %14 = vector.broadcast %cst_4 : f32 to vector<2x1xf32>
    %15 = arith.addf %11, %14 : vector<2x1xf32>
    %16 = math.rsqrt %15 : vector<2x1xf32>
    %17 = vector.broadcast %16 : vector<2x1xf32> to vector<2x128xf32>
    %18 = arith.mulf %13, %17 : vector<2x128xf32>
    %19 = arith.truncf %18 : vector<2x128xf32> to vector<2x128xbf16>
    %c0_5 = arith.constant 0 : index
    %c0_6 = arith.constant 0 : index
    %20 = vector.load %arg2[%c0_5, %c0_6] : memref<128x128xbf16, #tpu.memory_space<vmem>>, vector<128x128xbf16>
    %cst_7 = arith.constant dense<0.000000e+00> : vector<2x128xf32>
    %21 = tpu.matmul %19, %20, %cst_7 {dimension_numbers = #tpu.dot_dimension_numbers<[1], [0], [0], [1], [0, 0, 1, 1], [], []>} : vector<2x128xbf16>, vector<128x128xbf16>, vector<2x128xf32> -> vector<2x128xf32>
    %c0_8 = arith.constant 0 : index
    %c0_9 = arith.constant 0 : index
    %22 = vector.load %arg3[%c0_8, %c0_9] : memref<1x128xf32, #tpu.memory_space<vmem>>, vector<1x128xf32>
    %23 = vector.broadcast %22 : vector<1x128xf32> to vector<2x128xf32>
    %24 = arith.addf %21, %23 : vector<2x128xf32>
    %c0_10 = arith.constant 0 : index
    %c0_11 = arith.constant 0 : index
    %25 = vector.load %arg4[%c0_10, %c0_11] : memref<2x128xf32, #tpu.memory_space<vmem>>, vector<2x128xf32>
    tpu.vector_store %arg4[%c0_10, %c0_11], %24 {strides = array<i32>} : memref<2x128xf32, #tpu.memory_space<vmem>>, vector<2x128xf32>,
    return
  }
  func.func @transform_0(%arg0: i32) -> (i32, i32) {
    %c0_i32 = arith.constant 0 : i32
    %c0_i32_0 = arith.constant 0 : i32
    return %arg0, %c0_i32 : i32, i32
  }
  func.func @transform_1(%arg0: i32) -> (i32, i32) {
    %c0_i32 = arith.constant 0 : i32
    %c0_i32_0 = arith.constant 0 : i32
    %c0_i32_1 = arith.constant 0 : i32
    return %c0_i32, %c0_i32_0 : i32, i32
  }
  func.func @transform_2(%arg0: i32) -> (i32, i32) {
    %c0_i32 = arith.constant 0 : i32
    %c0_i32_0 = arith.constant 0 : i32
    %c0_i32_1 = arith.constant 0 : i32
    return %c0_i32, %c0_i32_0 : i32, i32
  }
  func.func @transform_3(%arg0: i32) -> (i32, i32) {
    %c0_i32 = arith.constant 0 : i32
    %c0_i32_0 = arith.constant 0 : i32
    return %arg0, %c0_i32 : i32, i32
  }
}

</mosaic_0001>

<bundles_post_ra>
// kernel: tpu_custom_call.1
= control target key start
LH: loop header
LB: loop body
LE: loop exit
PB: predicated region body
PF: predicated region fallthrough
CT: control target
= control target key end

     0   :  { %8 = vsyncpa [#allocation3], 0  ;;  %s391_s0 = inlined_call_operand.hbm [shape: f32[2,1024], index: 0, kind: input, shape index: {}]   ;;  %s392_s1 = inlined_call_operand.hbm [shape: bf16[128,128], index: 1, kind: input, shape index: {}]   ;;  %s393_s2 = inlined_call_operand.vmem [shape: f32[1,128], index: 2, kind: input, shape index: {}]   ;;  %s394_s3 = inlined_call_operand.hbm [shape: f32[2,128], index: 3, kind: output, shape index: {}]  }
   0x1   :  { %9 = vsyncpa [#allocation6], 0 }
   0x2   :  { %10 = vsyncpa [#allocation4], 0  ;;  %s315_s12 = smov [#allocation2]   ;;  %s316_s14 = smov [#allocation5]  }
   0x3   :  { %s17_s13 = sshll.u32 %s315_s12, 4  ;;  %s26_s15 = sshll.u32 %s316_s14, 4  ;;  %s18_s13 = int_to_ptr.vmem [resolvable:$true] %s17_s13  ;;  %s342_s15 = int_to_ptr.vmem [resolvable:$true] %s26_s15 }
   0x4   :  { %s243_s18 = scalar_lea.hbm %s391_s0, 32  ;;  %s245_s23 = scalar_lea.hbm %s391_s0, 256 }
   0x5   :  { %p244_p0 = scmp.ne.s32.totalorder %s391_s0, %s243_s18  ;;  %p246_p1 = scmp.lt.u32.totalorder %s245_s23, %s243_s18 }
   0x6   :  { %p247_p2 = scmp.lt.u32.totalorder %s243_s18, %s391_s0 }
   0x8   :  { %p248_p3 = por %p247_p2, %p246_p1 }
   0xa   :  { %p249_p4 = pnand %p248_p3, %p244_p0 }
   0xc   :  { %252 = shalt.err (!%p249_p4)
}
   0xd   :  { %s253_s26 = scalar_lea.vmem %s18_s13, 32  ;;  %p258_p6 = scmp.lt.s32.totalorder %s18_s13, %s18_s13 }
   0xe   :  { %p254_p5 = scmp.ne.s32.totalorder %s18_s13, %s253_s26  ;;  %p259_p7 = scmp.lt.s32.totalorder %s253_s26, %s253_s26 }
  0x10   :  { %p260_p8 = por %p259_p7, %p258_p6 }
  0x12   :  { %p261_p9 = pnand %p260_p8, %p254_p5 }
  0x14   :  { %264 = shalt.err (!%p261_p9)
}
  0x15   :  { %20 = dma.hbm_to_vmem [thread:$0]  %s391_s0, 32, %s18_s13, [#allocation3]  }
  0x16   :  { %s265_s4 = scalar_lea.hbm %s392_s1, 1024 }
  0x17   :  { %p266_p10 = scmp.ne.s32.totalorder %s392_s1, %s265_s4  ;;  %p269_p11 = scmp.lt.u32.totalorder %s265_s4, %s392_s1 }
  0x19   :  { %p271_p12 = pnand %p269_p11, %p266_p10 }
  0x1b   :  { %274 = shalt.err (!%p271_p12)
}
  0x1c   :  { %s275_s9 = scalar_lea.vmem %s342_s15, 1024  ;;  %p280_p0 = scmp.lt.s32.totalorder %s342_s15, %s342_s15 }
  0x1d   :  { %p276_p13 = scmp.ne.s32.totalorder %s342_s15, %s275_s9  ;;  %p281_p1 = scmp.lt.s32.totalorder %s275_s9, %s275_s9 }
  0x1f   :  { %p282_p2 = por %p281_p1, %p280_p0 }
  0x21   :  { %p283_p3 = pnand %p282_p2, %p276_p13 }
  0x23   :  { %286 = shalt.err (!%p283_p3)
}
  0x24   :  { %s317_s0 = smov 64   ;;  %s318_s10 = smov 4  }
  0x25   :  { %32 = dma.hbm_to_vmem [thread:$0]  %s392_s1, 1024, %s342_s15, [#allocation6], %s317_s0, %s317_s0, %s318_s10  }
  0x26   :  { %309 = dma.done.wait [#allocation3], 32  }
  0x27   :  { %310 = vsyncadd [#allocation3], 4294967264 }
  0x28   :  { %311 = dma.done.wait [#allocation6], 1024  }
  0x29   :  { %312 = vsyncadd [#allocation6], 4294966272  ;;  %v319_v0 = vmov 0.0   ;;  %vm43_vm0 = vcmask 1041408   ;;  %v42_v1 = vld [vmem:[#allocation2] sm:$0x3] }
  0x2a   :  { %206 = vmatprep.subr.bf16.mxu0 %v319_v0  ;;  %v44_v2 = vsel %vm43_vm0, %v42_v1, 0.0  ;;  %v47_v3 = vmul.f32 %v42_v1, %v42_v1  ;;  %v233_v4 = vld [vmem:[#allocation5] sm:$0xff]   ;;  %v234_v6 = vld [vmem:[#allocation5 + $0x8] sm:$0xff]   ;;  %v235_v7 = vld [vmem:[#allocation5 + $0x10] sm:$0xff]   ;;  %vm320_vm1 = vmmov 0   ;;  %s321_s14 = smov [#allocation7]  }
  0x2b   :  { %45 = vadd.xlane.f32.xlu0 %v44_v2  ;;  %207 = vmatpush3.bf16.msra.mxu0 %v233_v4  ;;  %v236_v8 = vld [vmem:[#allocation5 + $0x18] sm:$0xff]   ;;  %v237_v9 = vld [vmem:[#allocation5 + $0x20] sm:$0xff]   ;;  %v238_v10 = vld [vmem:[#allocation5 + $0x28] sm:$0xff]   ;;  %s178_s15 = sshll.u32 %s321_s14, 4  ;;  %s179_s15 = int_to_ptr.vmem [resolvable:$true] %s178_s15 }
  0x2c   :  { %v48_v5 = vsel %vm43_vm0, %v47_v3, 0.0  ;;  %208 = vmatprep.subr.bf16.mxu0 %v319_v0  ;;  %222 = vmatprep.mubr.msk.bf16.mxu0 %vm320_vm1, %v319_v0  ;;  %v239_v11 = vld [vmem:[#allocation5 + $0x30] sm:$0xff]   ;;  %v240_v12 = vld [vmem:[#allocation5 + $0x38] sm:$0xff]   ;;  %s287_s16 = scalar_lea.vmem %s179_s15, 32  ;;  %p292_p5 = scmp.lt.s32.totalorder %s179_s15, %s179_s15 }
  0x2d   :  { %v188_v24 = vld [vmem:[%s393_s2] ss:$0 sm:$0xff]  ;;  %p288_p4 = scmp.ne.s32.totalorder %s179_s15, %s287_s16  ;;  %p293_p6 = scmp.lt.s32.totalorder %s287_s16, %s287_s16 }
  0x2f   :  { %49 = vadd.xlane.f32.xlu0 %v48_v5  ;;  %209 = vmatpush3.bf16.msra.mxu0 %v234_v6  ;;  %p294_p7 = por %p293_p6, %p292_p5 }
  0x30   :  { %210 = vmatprep.subr.bf16.mxu0 %v319_v0 }
  0x31   :  { %p295_p8 = pnand %p294_p7, %p288_p4 }
  0x33   :  { %211 = vmatpush3.bf16.msra.mxu0 %v235_v7 }
  0x34   :  { %212 = vmatprep.subr.bf16.mxu0 %v319_v0 }
  0x37   :  { %213 = vmatpush3.bf16.msra.mxu0 %v236_v8 }
  0x38   :  { %214 = vmatprep.subr.bf16.mxu0 %v319_v0 }
  0x3b   :  { %215 = vmatpush3.bf16.msra.mxu0 %v237_v9 }
  0x3c   :  { %216 = vmatprep.subr.bf16.mxu0 %v319_v0 }
  0x3f   :  { %217 = vmatpush3.bf16.msra.mxu0 %v238_v10 }
  0x40   :  { %218 = vmatprep.subr.bf16.mxu0 %v319_v0 }
  0x43   :  { %219 = vmatpush3.bf16.msra.mxu0 %v239_v11 }
  0x44   :  { %220 = vmatprep.subr.bf16.mxu0 %v319_v0 }
  0x47   :  { %221 = vmatpush3.bf16.msra.mxu0 %v240_v12 }
  0xb8   :  { %v46_v13 = vpop.xlane.xlu0 %45 }
  0xb9   :  { %v51_v14 = vmul.f32 0.0078125, %v46_v13 }
  0xbb   :  { %v53_v16 = vmul.f32 %v51_v14, %v51_v14  ;;  %v55_v20 = vsub.f32 %v42_v1, %v51_v14 }
  0xbc   :  { %v50_v15 = vpop.xlane.xlu0 %49 }
  0xbd   :  { %v52_v17 = vmul.f32 0.0078125, %v50_v15 }
  0xbf   :  { %v54_v18 = vsub.f32 %v52_v17, %v53_v16 }
  0xc1   :  { %v56_v19 = vadd.f32 1e-05, %v54_v18 }
  0xc3   :  { %241 = vrsqrt.f32 %v56_v19 }
  0xcd   :  { %v242_v21 = vpop.eup %241 }
  0xce   :  { %v58_v22 = vmul.f32 %v242_v21, %v55_v20 }
  0xd0   :  { %v59_v23 = vpack.c.bf16 %v58_v22, %v58_v22 }
  0xd2   :  { %223 = vmatmul.mubr.bf16.vlgmr.msra.gmra.mrb[0].mxu0 %v59_v23 }
 0x1a5   :  { %v165_v25 = vpop.f32.mrb[0].mxu0 }
 0x1a6   :  { %v166_v26 = vadd.f32 %v188_v24, %v165_v25  ;;  %v224_v27 = vpop.f32.mrb[1].mxu0 }
 0x1a7   :  { %v168_v28 = vpop.f32.mrb[2].mxu0 }
 0x1a8   :  { %171 = vst [vmem:[#allocation7] sm:$0x3] %v166_v26  ;;  %v225_v29 = vpop.f32.mrb[3].mxu0 }
 0x1a9   :  { %298 = shalt.err (!%p295_p8)
}
 0x1aa   :  { %s299_s2 = scalar_lea.hbm %s394_s3, 32 }
 0x1ab   :  { %p300_p9 = scmp.ne.s32.totalorder %s394_s3, %s299_s2  ;;  %p303_p10 = scmp.lt.u32.totalorder %s299_s2, %s394_s3 }
 0x1ad   :  { %p305_p11 = pnand %p303_p10, %p300_p9 }
 0x1af   :  { %308 = shalt.err (!%p305_p11)
}
 0x1b0   :  { %181 = dma.vmem_to_hbm [thread:$0]  %s179_s15, 32, %s394_s3, [#allocation4]  }
 0x1b1   :  { %313 = dma.done.wait [#allocation4], 32  }
 0x1b2   :  { %314 = vsyncadd [#allocation4], 4294967264 }
 0x1b3   :  { %185 = vsyncpa [#allocation3], 1 }
 0x1b4   :  { %186 = vsyncpa [#allocation6], 1 }
 0x1b5   :  { %187 = vsyncpa [#allocation4], 1 }

</bundles_post_ra>
